<compile_context>
chip_gen: v5e
topology: v5e:2x2
jax: 0.10.0
libtpu: 0.0.40
codegen_flags: <defaults>
</compile_context>

<pallas_src>
import jax
import jax.numpy as jnp
from jax.experimental import pallas as pl
from jax.experimental.pallas import tpu as pltpu

SMOOTH = 1.0


def _dice_kernel(p_ref, t_ref, out_ref, inter_acc, denom_acc):
    b = pl.program_id(0)
    i = pl.program_id(1)

    @pl.when((b == 0) & (i == 0))
    def _init():
        inter_acc[...] = jnp.zeros_like(inter_acc)
        denom_acc[...] = jnp.zeros_like(denom_acc)

    p = p_ref[...].astype(jnp.float32)
    t = t_ref[...].astype(jnp.float32)

    # Pure elementwise (VPU) accumulation in the hot loop; no cross-lane
    # reductions or reshapes until the epilogue.
    inter_acc[...] += p * t
    denom_acc[...] += p + t

    @pl.when((b == pl.num_programs(0) - 1) & (i == pl.num_programs(1) - 1))
    def _finalize():
        inter = jnp.sum(inter_acc[...])
        denom = jnp.sum(denom_acc[...])
        dsc = (2.0 * inter + SMOOTH) / (denom + SMOOTH)
        out_ref[...] = jnp.reshape(1.0 - dsc, (1, 1))


def _pick_row_tile(H, W):
    """Row tile for the (H, W) channel-0 plane.

    Targets ~512*128 elements per block (~256 KiB f32) so the 1-D grid loop
    amortizes per-step overhead, while keeping the block a legal TPU tile:
    a multiple of 8 that divides H, or H itself as a fallback.
    """
    target_elems = 512 * 128
    th_cap = min(H, max(8, target_elems // max(W, 1)))
    th_cap = max(8, (th_cap // 8) * 8)
    t = th_cap
    while t >= 8:
        if H % t == 0:
            return t
        t -= 8
    return H  # full-dim block is always legal


def dice_loss(y_pred, y_true):
    assert y_pred.shape == y_true.shape
    B, C, H, W = y_pred.shape
    TH = _pick_row_tile(H, W)
    grid = (B, H // TH)

    # Block picks channel 0 directly from the NCHW array: only channel-0
    # bytes are DMA'd; B and C dims are squeezed out of the kernel refs.
    in_spec = pl.BlockSpec((None, None, TH, W), lambda b, i: (b, 0, i, 0))

    out = pl.pallas_call(
        _dice_kernel,
        out_shape=jax.ShapeDtypeStruct((1, 1), jnp.float32),
        grid_spec=pltpu.PrefetchScalarGridSpec(
            num_scalar_prefetch=0,
            grid=grid,
            in_specs=[in_spec, in_spec],
            out_specs=pl.BlockSpec((1, 1), lambda b, i: (0, 0)),
            scratch_shapes=[
                pltpu.VMEM((TH, W), jnp.float32),  # running sum of p*t
                pltpu.VMEM((TH, W), jnp.float32),  # running sum of p+t
            ],
        ),
        compiler_params=pltpu.CompilerParams(
            dimension_semantics=("arbitrary", "arbitrary"),
        ),
    )(y_pred, y_true)
    return out[0, 0]


def dice_loss_ref(y_pred, y_true):
    p = y_pred[:, 0].reshape(-1).astype(jnp.float32)
    t = y_true[:, 0].reshape(-1).astype(jnp.float32)
    inter = jnp.sum(p * t)
    dsc = (2.0 * inter + SMOOTH) / (jnp.sum(p) + jnp.sum(t) + SMOOTH)
    return 1.0 - dsc


if __name__ == "__main__":
    key = jax.random.PRNGKey(0)
    k1, k2 = jax.random.split(key)
    B, C, H, W = 2, 4, 16, 16
    # Probabilities / binary-ish masks, as a dice loss would see.
    y_pred = jax.nn.sigmoid(jax.random.normal(k1, (B, C, H, W), jnp.float32))
    y_true = (jax.random.uniform(k2, (B, C, H, W)) > 0.5).astype(jnp.float32)

    loss = jax.block_until_ready(dice_loss(y_pred, y_true))
    ref = jax.block_until_ready(dice_loss_ref(y_pred, y_true))
    assert jnp.allclose(loss, ref, atol=1e-5, rtol=1e-5), (loss, ref)
    print("KERNEL_OK")
</pallas_src>

<mosaic_0001>
module attributes {stable_mosaic.version = 11 : i64} {
  func.func @_dice_kernel(%arg0: i32, %arg1: i32, %arg2: memref<1x1x16x16xf32, #tpu.memory_space<vmem>>, %arg3: memref<1x1x16x16xf32, #tpu.memory_space<vmem>>, %arg4: memref<1x1xf32, #tpu.memory_space<vmem>>, %arg5: memref<16x16xf32, #tpu.memory_space<vmem>>, %arg6: memref<16x16xf32, #tpu.memory_space<vmem>>) attributes {dimension_semantics = [#tpu.dimension_semantics<arbitrary>, #tpu.dimension_semantics<arbitrary>], iteration_bounds = array<i64: 2, 1>, scalar_prefetch = 0 : i64, scratch_operands = 2 : i64, tpu.core_type = #tpu.core_type<tc>, window_params = [{transform_indices = @transform_0, window_bounds = array<i64: 1, 1, 16, 16>}, {transform_indices = @transform_1, window_bounds = array<i64: 1, 1, 16, 16>}, {pipeline_mode = #tpu.pipeline_mode<synchronous>, transform_indices = @transform_2, window_bounds = array<i64: 1, 1>}]} {
    %c0_i32 = arith.constant 0 : i32
    %0 = arith.cmpi eq, %arg0, %c0_i32 : i32
    %c0_i32_0 = arith.constant 0 : i32
    %1 = arith.cmpi eq, %arg1, %c0_i32_0 : i32
    %2 = arith.andi %0, %1 : i1
    %3 = arith.extui %2 : i1 to i32
    %c0_i32_1 = arith.constant 0 : i32
    %4 = arith.cmpi ne, %3, %c0_i32_1 : i32
    scf.if %4 {
      %cst = arith.constant 0.000000e+00 : f32
      %22 = vector.broadcast %cst : f32 to vector<16x16xf32>
      %c0_19 = arith.constant 0 : index
      %c0_20 = arith.constant 0 : index
      %23 = vector.load %arg5[%c0_19, %c0_20] : memref<16x16xf32, #tpu.memory_space<vmem>>, vector<16x16xf32>
      tpu.vector_store %arg5[%c0_19, %c0_20], %22 {strides = array<i32>} : memref<16x16xf32, #tpu.memory_space<vmem>>, vector<16x16xf32>,
      %cst_21 = arith.constant 0.000000e+00 : f32
      %24 = vector.broadcast %cst_21 : f32 to vector<16x16xf32>
      %c0_22 = arith.constant 0 : index
      %c0_23 = arith.constant 0 : index
      %25 = vector.load %arg6[%c0_22, %c0_23] : memref<16x16xf32, #tpu.memory_space<vmem>>, vector<16x16xf32>
      tpu.vector_store %arg6[%c0_22, %c0_23], %24 {strides = array<i32>} : memref<16x16xf32, #tpu.memory_space<vmem>>, vector<16x16xf32>,
    } else {
    }
    %c0 = arith.constant 0 : index
    %c0_2 = arith.constant 0 : index
    %c0_3 = arith.constant 0 : index
    %c0_4 = arith.constant 0 : index
    %5 = vector.load %arg2[%c0, %c0_2, %c0_3, %c0_4] : memref<1x1x16x16xf32, #tpu.memory_space<vmem>>, vector<1x1x16x16xf32>
    %6 = vector.shape_cast %5 : vector<1x1x16x16xf32> to vector<16x16xf32>
    %c0_5 = arith.constant 0 : index
    %c0_6 = arith.constant 0 : index
    %c0_7 = arith.constant 0 : index
    %c0_8 = arith.constant 0 : index
    %7 = vector.load %arg3[%c0_5, %c0_6, %c0_7, %c0_8] : memref<1x1x16x16xf32, #tpu.memory_space<vmem>>, vector<1x1x16x16xf32>
    %8 = vector.shape_cast %7 : vector<1x1x16x16xf32> to vector<16x16xf32>
    %c0_9 = arith.constant 0 : index
    %c0_10 = arith.constant 0 : index
    %9 = vector.load %arg5[%c0_9, %c0_10] : memref<16x16xf32, #tpu.memory_space<vmem>>, vector<16x16xf32>
    %10 = arith.mulf %6, %8 : vector<16x16xf32>
    %11 = arith.addf %9, %10 : vector<16x16xf32>
    %c0_11 = arith.constant 0 : index
    %c0_12 = arith.constant 0 : index
    %12 = vector.load %arg5[%c0_11, %c0_12] : memref<16x16xf32, #tpu.memory_space<vmem>>, vector<16x16xf32>
    tpu.vector_store %arg5[%c0_11, %c0_12], %11 {strides = array<i32>} : memref<16x16xf32, #tpu.memory_space<vmem>>, vector<16x16xf32>,
    %c0_13 = arith.constant 0 : index
    %c0_14 = arith.constant 0 : index
    %13 = vector.load %arg6[%c0_13, %c0_14] : memref<16x16xf32, #tpu.memory_space<vmem>>, vector<16x16xf32>
    %14 = arith.addf %6, %8 : vector<16x16xf32>
    %15 = arith.addf %13, %14 : vector<16x16xf32>
    %c0_15 = arith.constant 0 : index
    %c0_16 = arith.constant 0 : index
    %16 = vector.load %arg6[%c0_15, %c0_16] : memref<16x16xf32, #tpu.memory_space<vmem>>, vector<16x16xf32>
    tpu.vector_store %arg6[%c0_15, %c0_16], %15 {strides = array<i32>} : memref<16x16xf32, #tpu.memory_space<vmem>>, vector<16x16xf32>,
    %c1_i32 = arith.constant 1 : i32
    %17 = arith.cmpi eq, %arg0, %c1_i32 : i32
    %c0_i32_17 = arith.constant 0 : i32
    %18 = arith.cmpi eq, %arg1, %c0_i32_17 : i32
    %19 = arith.andi %17, %18 : i1
    %20 = arith.extui %19 : i1 to i32
    %c0_i32_18 = arith.constant 0 : i32
    %21 = arith.cmpi ne, %20, %c0_i32_18 : i32
    scf.if %21 {
      %c0_19 = arith.constant 0 : index
      %c0_20 = arith.constant 0 : index
      %22 = vector.load %arg5[%c0_19, %c0_20] : memref<16x16xf32, #tpu.memory_space<vmem>>, vector<16x16xf32>
      %23 = vector.shape_cast %22 : vector<16x16xf32> to vector<1x16x16xf32>
      %cst = arith.constant dense<0.000000e+00> : vector<1xf32>
      %24 = vector.multi_reduction <add>, %23, %cst [1, 2] : vector<1x16x16xf32> to vector<1xf32>
      %25 = vector.shape_cast %24 : vector<1xf32> to vector<1x1x1xf32>
      %26 = vector.extract %25[0, 0, 0] : f32 from vector<1x1x1xf32>
      %c0_21 = arith.constant 0 : index
      %c0_22 = arith.constant 0 : index
      %27 = vector.load %arg6[%c0_21, %c0_22] : memref<16x16xf32, #tpu.memory_space<vmem>>, vector<16x16xf32>
      %28 = vector.shape_cast %27 : vector<16x16xf32> to vector<1x16x16xf32>
      %cst_23 = arith.constant dense<0.000000e+00> : vector<1xf32>
      %29 = vector.multi_reduction <add>, %28, %cst_23 [1, 2] : vector<1x16x16xf32> to vector<1xf32>
      %30 = vector.shape_cast %29 : vector<1xf32> to vector<1x1x1xf32>
      %31 = vector.extract %30[0, 0, 0] : f32 from vector<1x1x1xf32>
      %cst_24 = arith.constant 2.000000e+00 : f32
      %32 = arith.mulf %cst_24, %26 : f32
      %cst_25 = arith.constant 1.000000e+00 : f32
      %33 = arith.addf %32, %cst_25 : f32
      %cst_26 = arith.constant 1.000000e+00 : f32
      %34 = arith.addf %31, %cst_26 : f32
      %35 = arith.divf %33, %34 : f32
      %cst_27 = arith.constant 1.000000e+00 : f32
      %36 = arith.subf %cst_27, %35 : f32
      %37 = vector.broadcast %36 : f32 to vector<1x1xf32>
      %c0_28 = arith.constant 0 : index
      %c0_29 = arith.constant 0 : index
      %38 = vector.load %arg4[%c0_28, %c0_29] : memref<1x1xf32, #tpu.memory_space<vmem>>, vector<1x1xf32>
      tpu.vector_store %arg4[%c0_28, %c0_29], %37 {strides = array<i32>} : memref<1x1xf32, #tpu.memory_space<vmem>>, vector<1x1xf32>,
    } else {
    }
    return
  }
  func.func @transform_0(%arg0: i32, %arg1: i32) -> (i32, i32, i32, i32) {
    %c0_i32 = arith.constant 0 : i32
    %c0_i32_0 = arith.constant 0 : i32
    %c0_i32_1 = arith.constant 0 : i32
    return %arg0, %c0_i32, %arg1, %c0_i32_0 : i32, i32, i32, i32
  }
  func.func @transform_1(%arg0: i32, %arg1: i32) -> (i32, i32, i32, i32) {
    %c0_i32 = arith.constant 0 : i32
    %c0_i32_0 = arith.constant 0 : i32
    %c0_i32_1 = arith.constant 0 : i32
    return %arg0, %c0_i32, %arg1, %c0_i32_0 : i32, i32, i32, i32
  }
  func.func @transform_2(%arg0: i32, %arg1: i32) -> (i32, i32) {
    %c0_i32 = arith.constant 0 : i32
    %c0_i32_0 = arith.constant 0 : i32
    %c0_i32_1 = arith.constant 0 : i32
    return %c0_i32, %c0_i32_0 : i32, i32
  }
}

</mosaic_0001>

<bundles_post_ra>
// kernel: tpu_custom_call.1
= control target key start
LH: loop header
LB: loop body
LE: loop exit
PB: predicated region body
PF: predicated region fallthrough
CT: control target
= control target key end

     0   :  { %7 = vsyncpa [#allocation5], 0  ;;  %s791_s0 = inlined_call_operand.hbm [shape: f32[2,4,16,16], index: 0, kind: input, shape index: {}]   ;;  %s792_s1 = inlined_call_operand.hbm [shape: f32[2,4,16,16], index: 1, kind: input, shape index: {}]   ;;  %s793_s2 = inlined_call_operand.hbm [shape: f32[1,1], index: 2, kind: output, shape index: {}]  }
   0x1   :  { %9 = vsyncpa [#allocation5 + $0x1], 0 }
   0x2   :  { %10 = vsyncpa [#allocation8], 0 }
   0x3   :  { %12 = vsyncpa [#allocation8 + $0x1], 0 }
   0x4   :  { %13 = vsyncpa [#allocation6], 0  ;;  %s669_s9 = smov 0   ;;  %s671_s10 = smov 0  }
   0x5   :  { %s673_s11 = smov 0   ;;  %s675_s12 = smov 0  }
   0x6   :  { %s677_s13 = smov 0   ;;  %s679_s14 = smov 0  }
   0x7 LB: > { %s402_s15 = sadd.s32 4294967295, %s648_s14   ;;  %s31_s16 = sadd.s32 1, %s644_s13  ;;  %s648_s14 = sphi %s679_s14, %s19_s14   ;;  %s644_s13 = sphi %s677_s13, %s801_s13   ;;  %s640_s12 = sphi %s675_s12, %s800_s12   ;;  %s636_s11 = sphi %s673_s11, %s799_s11   ;;  %s632_s10 = sphi %s671_s10, %s798_s10   ;;  %s628_s9 = sphi %s669_s9, %s797_s9  }
   0x8   : > { %p33_p0 = scmp.ge.s32.totalorder %s31_s16, 2  ;;  %s40_s17 = sadd.s32 1, %s636_s11 }
   0x9   : > { %p47_p1 = scmp.ne.s32.totalorder %s636_s11, %s632_s10  ;;  %p48_p2 = scmp.eq.s32.totalorder %s648_s14, 0 }
   0xa   : > { %s803_s16 = smov (%p33_p0, %s31_s16), 0  ;;  %p53_p4 = scmp.ne.s32.totalorder %s632_s10, %s628_s9 }
   0xb   : > { %p705_p3 = por %p48_p2, %p47_p1  ;;  %s35_s19 = ssub.s32 %s644_s13, %s803_s16 }
   0xc   : > { %p54_p5 = scmp.eq.s32.totalorder %s402_s15, 0  ;;  %p38_p6 = scmp.eq.s32.totalorder %s35_s19, 0 }
   0xd   : > { %p445_p8 = scmp.lt.s32.totalorder %s648_s14, 2  ;;  %s723_s22 = sand.u32 1, %s636_s11  }
   0xe   : > { %p714_p7 = por %p54_p5, %p53_p4  ;;  %s420_s23 = sshll.u32 %s644_s13, 6 }
   0xf   : > { %s720_s21 = scalar_select %p38_p6, %s636_s11, %s40_s17  }
  0x10   : > { %s405_s24 = sshll.u32 %s723_s22, 4  ;;  %s137_s27 = scalar_lea.hbm %s791_s0, %s420_s23 }
  0x11   : > { %s138_s28 = sshll.u32 %s137_s27, 4  ;;  %s130_s29 = scalar_lea.vmem [#allocation4], %s405_s24  ;;  %s139_s28 = int_to_ptr.hbm [resolvable:$true] %s138_s28 }
  0x12   : > { %s140_s30 = sshll.u32 %s130_s29, 4  ;;  %p732_p9 = pnand %p445_p8, %p705_p3  ;;  %s141_s30 = int_to_ptr.vmem [resolvable:$true] %s140_s30 }
  0x13   : > { %p411_p10 = scmp.ge.s32.totalorder %s648_s14, 1  ;;  %p172_p11 = scmp.lt.s32.totalorder %s648_s14, 3 }
  0x14   : > { %s127_s4 = scalar_lea.sflag [#allocation5], %s723_s22  ;;  %s650_s5 = smov 128  }
  0x15   : > { %s651_s6 = smov 8   ;;  %p173_p12 = pnand %p411_p10, %p172_p11 }
  0x16   : > { %441 = dma.hbm_to_vmem [thread:$0]  (!%p732_p9), %s139_s28, 256, %s141_s30, %s127_s4, %s650_s5, %s650_s5, %s651_s6  }
  0x17   : > { %s161_s9 = scalar_lea.hbm %s792_s1, %s420_s23  ;;  %s154_s18 = scalar_lea.vmem [#allocation7], %s405_s24 }
  0x18   : > { %s162_s17 = sshll.u32 %s161_s9, 4  ;;  %s164_s19 = sshll.u32 %s154_s18, 4  ;;  %s163_s17 = int_to_ptr.hbm [resolvable:$true] %s162_s17  ;;  %s165_s19 = int_to_ptr.vmem [resolvable:$true] %s164_s19 }
  0x19   : > { %s151_s25 = scalar_lea.sflag [#allocation8], %s723_s22  ;;  %176 = sbr.rel (%p173_p12) target bundleno = 326 (0x146), region = 28 }
  0x1a   : > { %444 = dma.hbm_to_vmem [thread:$0]  (!%p732_p9), %s163_s17, 256, %s165_s19, %s151_s25, %s650_s5, %s650_s5, %s651_s6  }
  0x1b   : > { %s178_s26 = sand.u32 (!%p173_p12), 1, %s632_s10  }
  0x1c   : > { %s412_s27 = sshll.u32 (!%p173_p12), %s178_s26, 4  ;;  %s179_s29 = scalar_lea.sflag (!%p173_p12), [#allocation5], %s178_s26 }
  0x1d   : > { %s182_s28 = scalar_lea.vmem (!%p173_p12), [#allocation4], %s412_s27 }
  0x1e   : > { %615 = dma.done.wait (%p714_p7), %s179_s29, 256  }
  0x1f   : > { %617 = vsyncadd (%p714_p7), %s179_s29, 4294967040  ;;  %s189_s23 = scalar_lea.sflag [#allocation8], %s178_s26  ;;  %s192_s24 = scalar_lea.vmem [#allocation7], %s412_s27 }
  0x20   : > { %619 = dma.done.wait (%p714_p7), %s189_s23, 256  }
  0x21   : > { %621 = vsyncadd (%p714_p7), %s189_s23, 4294967040  ;;  %p216_p13 = scmp.eq.s32.totalorder %s640_s12, 0 }
  0x22   : > { %vm222_vm0 = vcmask (%p216_p13), 130048   ;;  %v652_v0 = vmov (%p216_p13), 0.0  }
  0x23   : > { %221 = sbr.rel (!%p216_p13) target bundleno = 40 (0x28), region = 40  ;;  %223 = vst.msk [vmem:[#allocation2] sm:$0xff] (%p216_p13), %vm222_vm0, %v652_v0 }
  0x24   : > { %224 = vst.msk [vmem:[#allocation2 + $0x8] sm:$0xff] (%p216_p13), %vm222_vm0, %v652_v0 }
  0x25   : > { %225 = vst.msk [vmem:[#allocation3] sm:$0xff] (%p216_p13), %vm222_vm0, %v652_v0 }
  0x26   : > { %226 = vst.msk [vmem:[#allocation3 + $0x8] sm:$0xff] (%p216_p13), %vm222_vm0, %v652_v0 }
  0x28 PF: > { %v227_v1 = vld [vmem:[%s182_s28] sm:$0xff]  ;;  %p248_p0 = scmp.eq.s32.totalorder %s640_s12, 1  ;;  %v228_v5 = vld [vmem:[%s182_s28 + $0x8] sm:$0xff]  ;;  %vm237_vm1 = vcmask 130048  }
  0x29   : > { %v229_v2 = vld [vmem:[%s192_s24] sm:$0xff]  ;;  %v230_v6 = vld [vmem:[%s192_s24 + $0x8] sm:$0xff]  ;;  %vm303_vm6 = vcmask (%p248_p0), 0  }
  0x2a   : > { %v231_v3 = vld [vmem:[#allocation2] sm:$0xff]  ;;  %v233_v4 = vmul.f32 %v229_v2, %v227_v1  ;;  %v242_v8 = vadd.f32 %v229_v2, %v227_v1  ;;  %v234_v9 = vmul.f32 %v230_v6, %v228_v5  ;;  %v243_v12 = vadd.f32 %v230_v6, %v228_v5 }
  0x2b   : > { %v232_v7 = vld [vmem:[#allocation2 + $0x8] sm:$0xff] }
  0x2c   : > { %v240_v10 = vld [vmem:[#allocation3] sm:$0xff]  ;;  %v235_v13 = vadd.f32 %v233_v4, %v231_v3  ;;  %v236_v15 = vadd.f32 %v234_v9, %v232_v7 }
  0x2d   : > { %v241_v11 = vld [vmem:[#allocation3 + $0x8] sm:$0xff]  ;;  %v244_v14 = vadd.f32 %v242_v8, %v240_v10  ;;  %252 = sbr.rel (!%p248_p0) target bundleno = 320 (0x140), region = 44 }
  0x2e   : > { %v245_v16 = vadd.f32 %v243_v12, %v241_v11  ;;  %238 = vst.msk [vmem:[#allocation2] sm:$0xff] %vm237_vm1, %v235_v13 }
  0x2f   : > { %239 = vst.msk [vmem:[#allocation2 + $0x8] sm:$0xff] %vm237_vm1, %v236_v15 }
  0x30   : > { %246 = vst.msk [vmem:[#allocation3] sm:$0xff] %vm237_vm1, %v244_v14 }
  0x31   : > { %247 = vst.msk [vmem:[#allocation3 + $0x8] sm:$0xff] %vm237_vm1, %v245_v16 }
  0x35   : > { %v253_v17 = vld [vmem:[#allocation2] sm:$0xff] }
  0x36   : > { %v254_v18 = vld [vmem:[#allocation2 + $0x8] sm:$0xff]  ;;  %v255_v19 = vsel %vm237_vm1, %v253_v17, 0.0 }
  0x37   : > { %v256_v20 = vsel %vm237_vm1, %v254_v18, 0.0  ;;  %v267_v22 = vld [vmem:[#allocation3] sm:$0xff] }
  0x38   : > { %v257_v21 = vadd.f32 %v256_v20, %v255_v19  ;;  %v268_v23 = vld [vmem:[#allocation3 + $0x8] sm:$0xff]  ;;  %v269_v24 = vsel %vm237_vm1, %v267_v22, 0.0 }
  0x39   : > { %v270_v25 = vsel %vm237_vm1, %v268_v23, 0.0 }
  0x3a   : > { %258 = vadd.xlane.f32.xlu0 %v257_v21  ;;  %v271_v26 = vadd.f32 %v270_v25, %v269_v24 }
  0x42   : > { %272 = vadd.xlane.f32.xlu0 %v271_v26 }
  0xad   : > { %v259_v27 = vpop.xlane.xlu0 %258 }
  0xae   : > { %v260_v28 = vrot.slane %v259_v27, 4 }
  0xb0   : > { %v261_v29 = vadd.f32 %v260_v28, %v259_v27 }
  0xb2   : > { %v262_v30 = vrot.slane %v261_v29, 2 }
  0xb4   : > { %v263_v31 = vadd.f32 %v262_v30, %v261_v29 }
  0xb5   : > { %v273_v32 = vpop.xlane.xlu0 %272 }
  0xb6   : > { %v274_v33 = vrot.slane %v273_v32, 4  ;;  %v264_v34 = vrot.slane %v263_v31, 1 }
  0xb8   : > { %v275_v35 = vadd.f32 %v274_v33, %v273_v32  ;;  %v265_v36 = vadd.f32 %v264_v34, %v263_v31 }
  0xba   : > { %v276_v37 = vrot.slane %v275_v35, 2  ;;  %424 = vpush %v265_v36 }
  0xbc   : > { %v277_v38 = vadd.f32 %v276_v37, %v275_v35 }
  0xbe   : > { %v278_v39 = vrot.slane %v277_v38, 1 }
  0xc0   : > { %v279_v40 = vadd.f32 %v278_v39, %v277_v38 }
  0xc2   : > { %426 = vpush %v279_v40 }
  0xeb   : > { %s425_s12 = spop %424 }
  0xec   : > { %s281_s30 = smul.f32 2.0, %s425_s12 }
  0xee   : > { %s282_s3 = sadd.f32 1.0, %s281_s30 }
  0xf3   : > { %s427_s20 = spop %426 }
  0xf4   : > { %s283_s22 = sadd.f32 1.0, %s427_s20 }
  0xf6   : > { %v284_v41 = vstv %s283_s22 }
  0xf7   : > { %500 = vrcp.f32 %v284_v41  ;;  %v296_v45 = vand.u32 2147483648, %v284_v41  ;;  %v294_v47 = vand.u32 2147483647, %v284_v41  ;;  %vm290_vm3 = vweird.f32 %v284_v41 }
  0xf9   : > { %v297_v49 = vor.u32 1.1754944e-38, %v296_v45  ;;  %vm295_vm5 = vcmp.eq.f32.partialorder %v294_v47, 8.507059e+37 }
  0xfd   : > { %v501_v42 = vpop.eup %500 }
  0xfe   : > { %v286_v43 = vmul.f32 %v501_v42, %v284_v41  ;;  %vm291_vm2 = vweird.f32 %v501_v42 }
  0xff   : > { %vm292_vm4 = vmor %vm290_vm3, %vm291_vm2 }
 0x100   : > { %v287_v44 = vsub.f32 1.0, %v286_v43 }
 0x102   : > { %v288_v46 = vmul.f32 %v501_v42, %v287_v44 }
 0x104   : > { %v289_v48 = vadd.f32 %v501_v42, %v288_v46 }
 0x106   : > { %v293_v50 = vsel %vm292_vm4, %v501_v42, %v289_v48 }
 0x107   : > { %v298_v51 = vsel %vm295_vm5, %v297_v49, %v293_v50 }
 0x108   : > { %428 = vpush %v298_v51 }
 0x139   : > { %s429_s4 = spop %428 }
 0x13a   : > { %s300_s5 = smul.f32 %s429_s4, %s282_s3 }
 0x13c   : > { %s301_s6 = ssub.f32 1.0, %s300_s5 }
 0x13e   : > { %v302_v52 = vstv %s301_s6 }
 0x13f   : > { %304 = vst.msk [vmem:[#allocation9] sm:$0x1] %vm303_vm6, %v302_v52 }
 0x140 PF: > { %p446_p1 = scmp.eq.s32.totalorder %s402_s15, 1  ;;  %s313_s9 = sshll.u32 %s793_s2, 4  ;;  %s314_s9 = int_to_ptr.hbm [resolvable:$true] %s313_s9 }
 0x141   : > { %s653_s17 = smov [#allocation9]  }
 0x142   : > { %s311_s18 = sshll.u32 %s653_s17, 4  ;;  %s312_s18 = int_to_ptr.vmem [resolvable:$true] %s311_s18 }
 0x143   : > { %435 = dma.vmem_to_hbm [thread:$0]  (%p446_p1), %s312_s18, 16, %s314_s9, [#allocation6]  }
 0x144   : > { %623 = dma.done.wait (%p446_p1), [#allocation6], 16  }
 0x145   : > { %625 = vsyncadd (%p446_p1), [#allocation6], 4294967280 }
 0x146 PF: > { %s19_s14 = sadd.s32 1, %s648_s14   ;;  %s797_s9 = smov %s632_s10 }
 0x147   : > { %p16_p2 = scmp.ge.s32.totalorder %s19_s14, 4   ;;  %s798_s10 = smov %s636_s11 }
 0x148   : > { %s799_s11 = smov %s720_s21  ;;  %s800_s12 = smov %s644_s13 }
 0x149   : > { %s801_s13 = smov %s803_s16  ;;  %18 = sbr.rel (!%p16_p2) target bundleno = 7 (0x7), region = 86 }
 0x14e   :  { %327 = vsyncpa [#allocation5], 1 }
 0x14f   :  { %329 = vsyncpa [#allocation5 + $0x1], 1 }
 0x150   :  { %330 = vsyncpa [#allocation8], 1 }
 0x151   :  { %332 = vsyncpa [#allocation8 + $0x1], 1 }
 0x152   :  { %333 = vsyncpa [#allocation6], 1 }
 0x153   :  { %335 = vsyncpa [#allocation6 + $0x1], 1 }

</bundles_post_ra>
